<compile_context>
chip_gen: v6e
topology: v6e:2x2x1
jax: 0.10.0
libtpu: 0.0.40
codegen_flags: <defaults>
</compile_context>

<pallas_src>
import functools

import jax
import jax.numpy as jnp
import numpy as np
from jax.experimental import pallas as pl
from jax.experimental.pallas import tpu as pltpu


def _ctc_greedy_kernel(e_ref, out_ref, carry_ref, *, blank: int):
    """Per-tile argmax + (unique_consecutive & != blank) keep-mask.

    e_ref:     (tile_t, L)  logits, native dtype
    out_ref:   (tile_t, 1)  int32, packed:  argmax_idx | (keep << 16)
    carry_ref: (1, 1)       int32 VMEM scratch: last argmax of previous tile
    """
    t = pl.program_id(0)

    @pl.when(t == 0)
    def _init():
        # Sentinel that never matches a real label -> first frame is always "new".
        carry_ref[...] = jnp.full((1, 1), -1, dtype=jnp.int32)

    e = e_ref[...]
    if e.dtype != jnp.float32:
        # In-register upcast (free vs. HBM traffic; v5e VPU has no bf16).
        e = e.astype(jnp.float32)

    idx = jnp.argmax(e, axis=-1).astype(jnp.int32)[:, None]        # (tile_t, 1)

    tile_t = idx.shape[0]
    row = jax.lax.broadcasted_iota(jnp.int32, idx.shape, 0)        # (tile_t, 1)

    # Previous frame's argmax: within-tile sublane roll; row 0 uses the
    # cross-tile carry so unique_consecutive is correct at tile boundaries.
    prev = pltpu.roll(idx, shift=1, axis=0)
    prev = jnp.where(row == 0, carry_ref[...], prev)

    keep = jnp.logical_and(idx != prev, idx != jnp.int32(blank)).astype(jnp.int32)
    out_ref[...] = idx | (keep << 16)

    # Carry this tile's last argmax into the next (sequential) grid step.
    carry_ref[...] = jnp.max(
        jnp.where(row == tile_t - 1, idx, jnp.int32(-1)), axis=0, keepdims=True
    )


@functools.partial(jax.jit, static_argnames=("blank", "tile_t"))
def ctc_greedy_packed(emission: jax.Array, blank: int, tile_t: int = 1024) -> jax.Array:
    """Returns packed (T,) int32: argmax index in low 16 bits, keep flag in bit 16."""
    T, L = emission.shape
    tile_t = max(8, (tile_t // 8) * 8)          # keep the tile a multiple of 8

    if T <= tile_t:
        tile = T                                # single block == full time axis (always legal)
        T_pad = T
    else:
        tile = tile_t
        T_pad = ((T + tile - 1) // tile) * tile

    x = emission
    if T_pad != T:
        # Only when T is not a multiple of tile_t; padded rows are discarded below.
        x = jnp.pad(x, ((0, T_pad - T), (0, 0)))

    packed = pl.pallas_call(
        functools.partial(_ctc_greedy_kernel, blank=blank),
        out_shape=jax.ShapeDtypeStruct((T_pad, 1), jnp.int32),
        grid=(T_pad // tile,),
        in_specs=[pl.BlockSpec((tile, L), lambda t: (t, 0))],
        out_specs=pl.BlockSpec((tile, 1), lambda t: (t, 0)),
        scratch_shapes=[pltpu.VMEM((1, 1), jnp.int32)],
        compiler_params=pltpu.CompilerParams(
            # Sequential T axis: required for the cross-tile carry.
            # TODO(synk): v7x could use "parallel" + a per-tile boundary fix-up
            # pass to engage both TensorCores.
            dimension_semantics=("arbitrary",)
        ),
    )(x)
    return packed[:T, 0]


def ctc_greedy_indices(emission: jax.Array, blank: int, tile_t: int = 1024):
    """Convenience wrapper: (argmax indices [T], keep mask [T]) as device arrays."""
    packed = ctc_greedy_packed(emission, blank=blank, tile_t=tile_t)
    return packed & 0xFFFF, packed >> 16


class GreedyCTCDecoder:
    """JAX/Pallas port of the PyTorch GreedyCTCDecoder module."""

    def __init__(self, labels, blank: int = 29):
        self.labels = labels
        self._labels_np = np.asarray(labels)
        self.blank = blank

    def __call__(self, emission: jax.Array):
        packed = ctc_greedy_packed(emission, blank=self.blank)
        packed_np = np.asarray(jax.block_until_ready(packed))   # single D2H transfer
        idx = packed_np & 0xFFFF
        keep = (packed_np >> 16).astype(bool)
        # Vectorized host glue: gather surviving labels, join, split into words.
        joined = "".join(self._labels_np[idx[keep]])
        return joined.replace("|", " ").strip().split()


def _numpy_reference(emission, blank):
    e = np.asarray(emission, dtype=np.float32)
    idx = np.argmax(e, axis=-1).astype(np.int32)
    keep = np.ones_like(idx, dtype=bool)
    keep[1:] = idx[1:] != idx[:-1]
    keep &= idx != blank
    return idx, keep


if __name__ == "__main__":
    # Deterministic label set: index 1 is the word separator '|', index 29 is blank.
    labels = ["-", "|"] + list("ABCDEFGHIJKLMNOPQRSTUVWXYZ") + ["'", "_"]
    assert len(labels) == 30
    blank = 29

    key = jax.random.PRNGKey(0)
    k1, k2 = jax.random.split(key)

    # --- Case 1: small emission, single tile (matches the torch module shape) ---
    num_seq, num_label = 16, len(labels)
    emission = jax.random.normal(k1, (num_seq, num_label), dtype=jnp.float32)

    decoder = GreedyCTCDecoder(labels, blank=blank)
    transcript = decoder(emission)

    idx, keep = ctc_greedy_indices(emission, blank)
    jax.block_until_ready((idx, keep))
    ref_idx, ref_keep = _numpy_reference(emission, blank)
    assert np.array_equal(np.asarray(idx), ref_idx)
    assert np.array_equal(np.asarray(keep).astype(bool), ref_keep)

    ref_joined = "".join(labels[int(i)] for i, k in zip(ref_idx, ref_keep) if k)
    ref_transcript = ref_joined.replace("|", " ").strip().split()
    assert transcript == ref_transcript

    # --- Case 2: multi-tile grid exercising the cross-tile carry -----------------
    # Rows repeated 3x -> consecutive duplicates straddle the 16-row tile
    # boundaries, so unique_consecutive is only correct if the carry works.
    base = jax.random.normal(k2, (16, num_label), dtype=jnp.float32)
    emission2 = jnp.repeat(base, 3, axis=0)                       # (48, 30)
    idx2, keep2 = ctc_greedy_indices(emission2, blank, tile_t=16)
    jax.block_until_ready((idx2, keep2))
    ref_idx2, ref_keep2 = _numpy_reference(emission2, blank)
    assert np.array_equal(np.asarray(idx2), ref_idx2)
    assert np.array_equal(np.asarray(keep2).astype(bool), ref_keep2)

    _ = transcript  # List[str], matching the torch module's return type
    print("KERNEL_OK")
</pallas_src>

<mosaic_0001>
module attributes {stable_mosaic.version = 11 : i64} {
  func.func @_ctc_greedy_kernel(%arg0: i32, %arg1: memref<16x30xf32, #tpu.memory_space<vmem>>, %arg2: memref<16x1xi32, #tpu.memory_space<vmem>>, %arg3: memref<1x1xi32, #tpu.memory_space<vmem>>) attributes {dimension_semantics = [#tpu.dimension_semantics<arbitrary>], iteration_bounds = array<i64: 1>, scalar_prefetch = 0 : i64, scratch_operands = 1 : i64, tpu.core_type = #tpu.core_type<tc>, window_params = [{transform_indices = @transform_0, window_bounds = array<i64: 16, 30>}, {transform_indices = @transform_1, window_bounds = array<i64: 16, 1>}]} {
    %c0_i32 = arith.constant 0 : i32
    %0 = arith.cmpi eq, %arg0, %c0_i32 : i32
    %1 = arith.extui %0 : i1 to i32
    %c0_i32_0 = arith.constant 0 : i32
    %2 = arith.cmpi ne, %1, %c0_i32_0 : i32
    scf.if %2 {
      %c-1_i32_9 = arith.constant -1 : i32
      %30 = vector.broadcast %c-1_i32_9 : i32 to vector<1x1xi32>
      %c0_10 = arith.constant 0 : index
      %c0_11 = arith.constant 0 : index
      %31 = vector.load %arg3[%c0_10, %c0_11] : memref<1x1xi32, #tpu.memory_space<vmem>>, vector<1x1xi32>
      tpu.vector_store %arg3[%c0_10, %c0_11], %30 {strides = array<i32>} : memref<1x1xi32, #tpu.memory_space<vmem>>, vector<1x1xi32>,
    } else {
    }
    %c0 = arith.constant 0 : index
    %c0_1 = arith.constant 0 : index
    %3 = vector.load %arg1[%c0, %c0_1] : memref<16x30xf32, #tpu.memory_space<vmem>>, vector<16x30xf32>
    %4 = tpu.reduce_index %3 {axis = 1 : i32, kind = #tpu.reduction_kind<arg_max>} : vector<16x30xf32> -> vector<16xi32>
    %5 = vector.shape_cast %4 : vector<16xi32> to vector<16x1xi32>
    %6 = tpu.iota {dimensions = array<i32: 0>} : vector<16x1xi32>
    %c1_i32 = arith.constant 1 : i32
    %7 = tpu.dynamic_rotate %5 by %c1_i32 dim 0 : vector<16x1xi32>, i32 -> vector<16x1xi32>
    %c0_i32_2 = arith.constant 0 : i32
    %8 = vector.broadcast %c0_i32_2 : i32 to vector<16x1xi32>
    %9 = arith.cmpi eq, %6, %8 : vector<16x1xi32>
    %c0_3 = arith.constant 0 : index
    %c0_4 = arith.constant 0 : index
    %10 = vector.load %arg3[%c0_3, %c0_4] : memref<1x1xi32, #tpu.memory_space<vmem>>, vector<1x1xi32>
    %11 = vector.shape_cast %10 : vector<1x1xi32> to vector<1x1xi32>
    %12 = vector.broadcast %11 : vector<1x1xi32> to vector<16x1xi32>
    %13 = arith.select %9, %12, %7 : vector<16x1xi1>, vector<16x1xi32>
    %14 = arith.cmpi ne, %5, %13 : vector<16x1xi32>
    %c29_i32 = arith.constant 29 : i32
    %15 = vector.broadcast %c29_i32 : i32 to vector<16x1xi32>
    %16 = arith.cmpi ne, %5, %15 : vector<16x1xi32>
    %17 = arith.andi %14, %16 : vector<16x1xi1>
    %18 = arith.extui %17 : vector<16x1xi1> to vector<16x1xi32>
    %c16_i32 = arith.constant 16 : i32
    %19 = vector.broadcast %c16_i32 : i32 to vector<16x1xi32>
    %20 = arith.shli %18, %19 : vector<16x1xi32>
    %21 = arith.ori %5, %20 : vector<16x1xi32>
    %c0_5 = arith.constant 0 : index
    %c0_6 = arith.constant 0 : index
    %22 = vector.load %arg2[%c0_5, %c0_6] : memref<16x1xi32, #tpu.memory_space<vmem>>, vector<16x1xi32>
    tpu.vector_store %arg2[%c0_5, %c0_6], %21 {strides = array<i32>} : memref<16x1xi32, #tpu.memory_space<vmem>>, vector<16x1xi32>,
    %c15_i32 = arith.constant 15 : i32
    %23 = vector.broadcast %c15_i32 : i32 to vector<16x1xi32>
    %24 = arith.cmpi eq, %6, %23 : vector<16x1xi32>
    %c-1_i32 = arith.constant -1 : i32
    %25 = vector.broadcast %c-1_i32 : i32 to vector<16x1xi32>
    %26 = arith.select %24, %5, %25 : vector<16x1xi1>, vector<16x1xi32>
    %cst = arith.constant dense<-2147483648> : vector<1xi32>
    %27 = vector.multi_reduction <maxsi>, %26, %cst [0] : vector<16x1xi32> to vector<1xi32>
    %28 = vector.shape_cast %27 : vector<1xi32> to vector<1x1xi32>
    %c0_7 = arith.constant 0 : index
    %c0_8 = arith.constant 0 : index
    %29 = vector.load %arg3[%c0_7, %c0_8] : memref<1x1xi32, #tpu.memory_space<vmem>>, vector<1x1xi32>
    tpu.vector_store %arg3[%c0_7, %c0_8], %28 {strides = array<i32>} : memref<1x1xi32, #tpu.memory_space<vmem>>, vector<1x1xi32>,
    return
  }
  func.func @transform_0(%arg0: i32) -> (i32, i32) {
    %c0_i32 = arith.constant 0 : i32
    %c0_i32_0 = arith.constant 0 : i32
    return %arg0, %c0_i32 : i32, i32
  }
  func.func @transform_1(%arg0: i32) -> (i32, i32) {
    %c0_i32 = arith.constant 0 : i32
    %c0_i32_0 = arith.constant 0 : i32
    return %arg0, %c0_i32 : i32, i32
  }
}

</mosaic_0001>

<bundles_post_ra>
// kernel: ctc_greedy_packed.1
= control target key start
LH: loop header
LB: loop body
LE: loop exit
PB: predicated region body
PF: predicated region fallthrough
CT: control target
= control target key end

     0   :  { %6 = vsyncpa [#allocation4], 0  ;;  %s120_s6 = smov [#allocation3]   ;;  %s146_s0 = inlined_call_operand.hbm [shape: f32[16,30], index: 0, kind: input, shape index: {}]   ;;  %s147_s1 = inlined_call_operand.vmem [shape: s32[16,1], index: 1, kind: output, shape index: {}]  }
   0x1   :  { %s12_s7 = sshll.u32 %s120_s6, 4  ;;  %s13_s7 = int_to_ptr.vmem [resolvable:$true] %s12_s7 }
   0x2   :  { %s106_s8 = scalar_lea.vmem %s13_s7, 256  ;;  %p111_p1 = scmp.lt.s32.totalorder %s13_s7, %s13_s7 }
   0x3   :  { %p107_p0 = scmp.ne.s32.totalorder %s13_s7, %s106_s8  ;;  %p112_p2 = scmp.lt.s32.totalorder %s106_s8, %s106_s8 }
   0x5   :  { %p113_p3 = por %p112_p2, %p111_p1 }
   0x7   :  { %p114_p4 = pnand %p113_p3, %p107_p0 }
   0x9   :  { %117 = shalt.err (!%p114_p4)
}
   0xa   :  { %s121_s9 = smov 128   ;;  %s122_s10 = smov 8  }
   0xb   :  { %18 = dma.hbm_to_vmem [thread:$0]  %s146_s0, 256, %s13_s7, [#allocation4], %s121_s9, %s121_s9, %s122_s10  }
   0xc   :  { %118 = dma.done.wait [#allocation4], 256  }
   0xd   :  { %119 = vsyncadd [#allocation4], 4294967040  ;;  %vm26_vm0 = vcmask 0   ;;  %v123_v0 = vmov 4294967295   ;;  %vm30_vm1 = vcmask 244736   ;;  %v29_v1 = vld [vmem:[#allocation3 + $0x8] sm:$0xff]  ;;  %v37_v5 = vlaneseq }
   0xe   :  { %27 = vst.msk [vmem:[#allocation2] sm:$0x1] %vm26_vm0, %v123_v0  ;;  %v28_v2 = vld [vmem:[#allocation3] sm:$0xff]  ;;  %v34_v3 = vsel %vm30_vm1, %v29_v1, -inf  ;;  %v124_v21 = vmov 0   ;;  %vm66_vm14 = vcmask 7168  }
   0xf   :  { %35 = vmax.index.xlane.f32.xlu0 %v34_v3  ;;  %v31_v4 = vsel %vm30_vm1, %v28_v2, -inf  ;;  %v38_v6 = vshrl.u32 %v37_v5, 7 }
  0x11   :  { %v39_v7 = vadd.s32 8, %v38_v6  ;;  %vm42_vm4 = vcmp.lt.s32.totalorder %v38_v6, 1  ;;  %vm45_vm5 = vcmp.eq.s32.totalorder %v38_v6, 0 }
  0x13   :  { %32 = vmax.index.xlane.f32.xlu0 %v31_v4  ;;  %vm70_vm2 = vcmp.eq.s32.totalorder %v39_v7, 15 }
  0x15   :  { %v91_v15 = vld [vmem:[#allocation2] ss:$0 sm:$0xff] }
  0x98   :  { %v36_v8 = vpop.xlane.xlu0 %35 }
  0x99   :  { %v72_v9 = vsel %vm70_vm2, %v36_v8, 4294967295  ;;  %v41_v13 = vrot.slane %v36_v8, 7  ;;  %vm57_vm7 = vcmp.ne.s32.totalorder %v36_v8, 29 }
  0x9a   :  { %vm92_vm3 = vcmp.lt.s32.totalorder %v72_v9, 4294967295 }
  0x9b   :  { %v74_v10 = vsel %vm92_vm3, 4294967295, %v72_v9 }
  0x9c   :  { %v75_v11 = vrot.slane %v74_v10, 4  ;;  %v33_v12 = vpop.xlane.xlu0 %32 }
  0x9d   :  { %v40_v14 = vrot.slane %v33_v12, 7  ;;  %vm56_vm10 = vcmp.ne.s32.totalorder %v33_v12, 29 }
  0x9e   :  { %vm76_vm6 = vcmp.gt.s32.totalorder %v74_v10, %v75_v11 }
  0x9f   :  { %v77_v16 = vsel %vm76_vm6, %v74_v10, %v75_v11  ;;  %v43_v17 = vsel %vm42_vm4, %v40_v14, %v41_v13  ;;  %v44_v18 = vsel %vm42_vm4, %v41_v13, %v40_v14 }
  0xa0   :  { %v78_v19 = vrot.slane %v77_v16, 2  ;;  %v52_v20 = vsel %vm45_vm5, %v91_v15, %v44_v18  ;;  %vm55_vm8 = vcmp.ne.s32.totalorder %v36_v8, %v43_v17 }
  0xa1   :  { %vm54_vm9 = vcmp.ne.s32.totalorder %v33_v12, %v52_v20  ;;  %vm59_vm11 = vmand %vm55_vm8, %vm57_vm7 }
  0xa2   :  { %vm79_vm12 = vcmp.gt.s32.totalorder %v77_v16, %v78_v19  ;;  %vm58_vm13 = vmand %vm54_vm9, %vm56_vm10  ;;  %v61_v22 = vsel %vm59_vm11, 1, %v124_v21 }
  0xa3   :  { %v80_v23 = vsel %vm79_vm12, %v77_v16, %v78_v19  ;;  %v60_v24 = vsel %vm58_vm13, 1, %v124_v21  ;;  %v63_v25 = vshll.u32 %v61_v22, 16 }
  0xa4   :  { %v81_v26 = vrot.slane %v80_v23, 1  ;;  %v62_v27 = vshll.u32 %v60_v24, 16 }
  0xa5   :  { %v65_v28 = vor.u32 %v63_v25, %v36_v8 }
  0xa6   :  { %vm82_vm15 = vcmp.gt.s32.totalorder %v80_v23, %v81_v26  ;;  %v64_v29 = vor.u32 %v62_v27, %v33_v12 }
  0xa7   :  { %v83_v30 = vsel %vm82_vm15, %v80_v23, %v81_v26  ;;  %68 = vst.msk [vmem:[%s147_s1 + $0x8] sm:$0xff] %vm66_vm14, %v65_v28 }
  0xa8   :  { %67 = vst.msk [vmem:[%s147_s1] sm:$0xff] %vm66_vm14, %v64_v29 }
  0xa9   :  { %85 = vst.msk [vmem:[#allocation2] sm:$0x1] %vm26_vm0, %v83_v30 }
  0xaa   :  { %90 = vsyncpa [#allocation4], 1 }

</bundles_post_ra>
